<compile_context>
chip_gen: v6e
topology: v6e:2x2x1
jax: 0.10.0
libtpu: 0.0.40
codegen_flags: <defaults>
</compile_context>

<pallas_src>
import functools

import jax
import jax.numpy as jnp
from jax.experimental import pallas as pl
from jax.experimental.pallas import tpu as pltpu


def _mlp_kernel(xT_ref, w1_ref, w2_ref, b2_ref, w3_ref, b3_ref, o_ref,
                *, h2_half):
    # fc1 + relu. b1 is folded into W1's 8th column (x's 8th feature == 1).
    # MXU: (H1, 8) @ (8, TB) -> (H1, TB), f32 accumulate.
    h1 = jnp.dot(w1_ref[...], xT_ref[...], preferred_element_type=jnp.float32)
    h1 = jnp.maximum(h1, 0.0)

    # fc2 + relu. Cast the streamed operand to the MXU dtype (bf16 in
    # production) so fc2 keeps the halved vmatmul-push cadence; f32 mode is a
    # no-op cast. Bias add / relu stay f32 on the VPU.
    h1 = h1.astype(w2_ref.dtype)
    h2 = jnp.dot(w2_ref[...], h1, preferred_element_type=jnp.float32) + b2_ref[...]
    h2 = jnp.maximum(h2, 0.0)

    # fc3 (N=1): keep it off the MXU. VPU multiply + sublane reduce; when H2
    # splits into 8-sublane-aligned halves, fold them with a plain VPU add
    # first so the XLU reduce (which shares slots with MXU pushes) is half as
    # deep.
    hw = h2 * w3_ref[...]
    if h2_half is not None:
        hw = hw[:h2_half, :] + hw[h2_half:, :]
    z = jnp.sum(hw, axis=0, keepdims=True) + b3_ref[...]           # (1, TB)

    # Lane-dense (1, TB) store -> unmasked vst.
    o_ref[...] = jax.nn.sigmoid(z) * 100.0


def simple_model_forward(x, params, *, tb=8192, use_bf16=True):
    """x: (B, 7) f32. params: PyTorch-layout W_i (out, in), b_i (out,).
    Returns (B, 1) f32."""
    w1, b1 = params["W1"], params["b1"]     # (H1, 7), (H1,)
    w2, b2 = params["W2"], params["b2"]     # (H2, H1), (H2,)
    w3, b3 = params["W3"], params["b3"]     # (1, H2), (1,)

    B = x.shape[0]
    h1_dim, h2_dim = w1.shape[0], w2.shape[0]
    mxu_dtype = jnp.bfloat16 if use_bf16 else jnp.float32

    # --- tile / grid sizing --------------------------------------------------
    tb = max(128, (tb // 128) * 128)
    tb = min(tb, max(128, pl.cdiv(B, 128) * 128))        # don't over-pad tiny B
    if pl.cdiv(B, 128) >= 2:                             # v7x megacore: >= 2 steps
        tb = min(tb, max(128, pl.cdiv(pl.cdiv(B, 2), 128) * 128))
    b_pad = pl.cdiv(B, tb) * tb

    # --- operand prep: single fused pad + cast + transpose -------------------
    # Feature dim padded 7 -> 8 with ONES (folds b1); batch dim padded with
    # zeros (padded lanes produce finite values that are sliced off).
    xT = jnp.pad(x.astype(jnp.float32), ((0, b_pad - B), (0, 1)),
                 constant_values=((0.0, 0.0), (0.0, 1.0))).astype(mxu_dtype).T

    w1b = jnp.concatenate(
        [w1.astype(jnp.float32), b1.reshape(h1_dim, 1).astype(jnp.float32)],
        axis=1).astype(mxu_dtype)                                   # (H1, 8)
    w2c = w2.astype(mxu_dtype)                                      # (H2, H1)
    b2c = b2.reshape(h2_dim, 1).astype(jnp.float32)
    w3c = w3.reshape(h2_dim, 1).astype(jnp.float32)
    b3c = b3.reshape(1, 1).astype(jnp.float32)

    h2_half = h2_dim // 2 if (h2_dim >= 16 and h2_dim % 16 == 0) else None
    kernel = functools.partial(_mlp_kernel, h2_half=h2_half)

    const = lambda i: (0, 0)   # weights/biases: VMEM-resident, one block
    out = pl.pallas_call(
        kernel,
        out_shape=jax.ShapeDtypeStruct((1, b_pad), jnp.float32),
        grid=(b_pad // tb,),
        in_specs=[
            pl.BlockSpec((8, tb), lambda i: (0, i)),        # x tile (pipelined)
            pl.BlockSpec((h1_dim, 8), const),               # W1 | b1
            pl.BlockSpec((h2_dim, h1_dim), const),          # W2
            pl.BlockSpec((h2_dim, 1), const),               # b2
            pl.BlockSpec((h2_dim, 1), const),               # W3 (column)
            pl.BlockSpec((1, 1), const),                    # b3
        ],
        out_specs=pl.BlockSpec((1, tb), lambda i: (0, i)),
        compiler_params=pltpu.CompilerParams(
            dimension_semantics=("parallel",)),
    )(xT, w1b, w2c, b2c, w3c, b3c)

    return out[0, :B].reshape(B, 1)


def init_params(key, hidden_size_1, hidden_size_2):
    """Deterministic init mirroring nn.Linear's U(-1/sqrt(fan_in), ...),
    in PyTorch layout: W (out, in), b (out,)."""
    def linear(k, fan_in, fan_out):
        kw, kb = jax.random.split(k)
        bound = 1.0 / jnp.sqrt(jnp.float32(fan_in))
        w = jax.random.uniform(kw, (fan_out, fan_in), jnp.float32, -bound, bound)
        b = jax.random.uniform(kb, (fan_out,), jnp.float32, -bound, bound)
        return w, b

    k1, k2, k3 = jax.random.split(key, 3)
    W1, b1 = linear(k1, 7, hidden_size_1)
    W2, b2 = linear(k2, hidden_size_1, hidden_size_2)
    W3, b3 = linear(k3, hidden_size_2, 1)
    return {"W1": W1, "b1": b1, "W2": W2, "b2": b2, "W3": W3, "b3": b3}


if __name__ == "__main__":
    key = jax.random.PRNGKey(0)
    k_x, k_p = jax.random.split(key)

    hidden_size_1, hidden_size_2 = 32, 16
    B = 8
    x = jax.random.normal(k_x, (B, 7), dtype=jnp.float32)
    params = init_params(k_p, hidden_size_1, hidden_size_2)

    # Pure-JAX reference (PyTorch semantics: x @ W.T + b).
    h1 = jnp.maximum(x @ params["W1"].T + params["b1"], 0.0)
    h2 = jnp.maximum(h1 @ params["W2"].T + params["b2"], 0.0)
    ref = jax.nn.sigmoid(h2 @ params["W3"].T + params["b3"]) * 100.0

    # Production path: bf16 MXU operands (looser tolerance — bf16 mantissa).
    out_bf16 = jax.block_until_ready(simple_model_forward(x, params))
    assert out_bf16.shape == (B, 1)
    assert jnp.allclose(out_bf16, ref, atol=3e-1, rtol=3e-2), (out_bf16, ref)

    # f32 path: tight reference check.
    out_f32 = jax.block_until_ready(
        simple_model_forward(x, params, use_bf16=False))
    assert out_f32.shape == (B, 1)
    assert jnp.allclose(out_f32, ref, atol=5e-4, rtol=5e-4), (out_f32, ref)

    print("KERNEL_OK")
</pallas_src>

<mosaic_0001>
module attributes {stable_mosaic.version = 11 : i64} {
  func.func @_mlp_kernel(%arg0: i32, %arg1: memref<8x128xbf16, #tpu.memory_space<vmem>>, %arg2: memref<32x8xbf16, #tpu.memory_space<vmem>>, %arg3: memref<16x32xbf16, #tpu.memory_space<vmem>>, %arg4: memref<16x1xf32, #tpu.memory_space<vmem>>, %arg5: memref<16x1xf32, #tpu.memory_space<vmem>>, %arg6: memref<1x1xf32, #tpu.memory_space<vmem>>, %arg7: memref<1x128xf32, #tpu.memory_space<vmem>>) attributes {dimension_semantics = [#tpu.dimension_semantics<parallel>], iteration_bounds = array<i64: 1>, scalar_prefetch = 0 : i64, scratch_operands = 0 : i64, tpu.core_type = #tpu.core_type<tc>, window_params = [{transform_indices = @transform_0, window_bounds = array<i64: 8, 128>}, {pipeline_mode = #tpu.pipeline_mode<synchronous>, transform_indices = @transform_1, window_bounds = array<i64: 32, 8>}, {pipeline_mode = #tpu.pipeline_mode<synchronous>, transform_indices = @transform_2, window_bounds = array<i64: 16, 32>}, {pipeline_mode = #tpu.pipeline_mode<synchronous>, transform_indices = @transform_3, window_bounds = array<i64: 16, 1>}, {pipeline_mode = #tpu.pipeline_mode<synchronous>, transform_indices = @transform_4, window_bounds = array<i64: 16, 1>}, {pipeline_mode = #tpu.pipeline_mode<synchronous>, transform_indices = @transform_5, window_bounds = array<i64: 1, 1>}, {transform_indices = @transform_6, window_bounds = array<i64: 1, 128>}]} {
    %c0 = arith.constant 0 : index
    %c0_0 = arith.constant 0 : index
    %0 = vector.load %arg2[%c0, %c0_0] : memref<32x8xbf16, #tpu.memory_space<vmem>>, vector<32x8xbf16>
    %c0_1 = arith.constant 0 : index
    %c0_2 = arith.constant 0 : index
    %1 = vector.load %arg1[%c0_1, %c0_2] : memref<8x128xbf16, #tpu.memory_space<vmem>>, vector<8x128xbf16>
    %cst = arith.constant dense<0.000000e+00> : vector<32x128xf32>
    %2 = tpu.matmul %0, %1, %cst {dimension_numbers = #tpu.dot_dimension_numbers<[1], [0], [0], [1], [0, 0, 1, 1], [], []>} : vector<32x8xbf16>, vector<8x128xbf16>, vector<32x128xf32> -> vector<32x128xf32>
    %cst_3 = arith.constant 0.000000e+00 : f32
    %3 = vector.broadcast %cst_3 : f32 to vector<32x128xf32>
    %4 = arith.maximumf %2, %3 : vector<32x128xf32>
    %5 = arith.truncf %4 : vector<32x128xf32> to vector<32x128xbf16>
    %c0_4 = arith.constant 0 : index
    %c0_5 = arith.constant 0 : index
    %6 = vector.load %arg3[%c0_4, %c0_5] : memref<16x32xbf16, #tpu.memory_space<vmem>>, vector<16x32xbf16>
    %cst_6 = arith.constant dense<0.000000e+00> : vector<16x128xf32>
    %7 = tpu.matmul %6, %5, %cst_6 {dimension_numbers = #tpu.dot_dimension_numbers<[1], [0], [0], [1], [0, 0, 1, 1], [], []>} : vector<16x32xbf16>, vector<32x128xbf16>, vector<16x128xf32> -> vector<16x128xf32>
    %c0_7 = arith.constant 0 : index
    %c0_8 = arith.constant 0 : index
    %8 = vector.load %arg4[%c0_7, %c0_8] : memref<16x1xf32, #tpu.memory_space<vmem>>, vector<16x1xf32>
    %9 = vector.broadcast %8 : vector<16x1xf32> to vector<16x128xf32>
    %10 = arith.addf %7, %9 : vector<16x128xf32>
    %cst_9 = arith.constant 0.000000e+00 : f32
    %11 = vector.broadcast %cst_9 : f32 to vector<16x128xf32>
    %12 = arith.maximumf %10, %11 : vector<16x128xf32>
    %c0_10 = arith.constant 0 : index
    %c0_11 = arith.constant 0 : index
    %13 = vector.load %arg5[%c0_10, %c0_11] : memref<16x1xf32, #tpu.memory_space<vmem>>, vector<16x1xf32>
    %14 = vector.broadcast %13 : vector<16x1xf32> to vector<16x128xf32>
    %15 = arith.mulf %12, %14 : vector<16x128xf32>
    %16 = vector.extract_strided_slice %15 {offsets = [0, 0], sizes = [8, 128], strides = [1, 1]} : vector<16x128xf32> to vector<8x128xf32>
    %17 = vector.extract_strided_slice %15 {offsets = [8, 0], sizes = [8, 128], strides = [1, 1]} : vector<16x128xf32> to vector<8x128xf32>
    %18 = arith.addf %16, %17 : vector<8x128xf32>
    %cst_12 = arith.constant dense<0.000000e+00> : vector<128xf32>
    %19 = vector.multi_reduction <add>, %18, %cst_12 [0] : vector<8x128xf32> to vector<128xf32>
    %20 = vector.shape_cast %19 : vector<128xf32> to vector<1x128xf32>
    %c0_13 = arith.constant 0 : index
    %c0_14 = arith.constant 0 : index
    %21 = vector.load %arg6[%c0_13, %c0_14] : memref<1x1xf32, #tpu.memory_space<vmem>>, vector<1x1xf32>
    %22 = vector.broadcast %21 : vector<1x1xf32> to vector<1x128xf32>
    %23 = arith.addf %20, %22 : vector<1x128xf32>
    %24 = arith.negf %23 : vector<1x128xf32>
    %25 = math.exp %24 : vector<1x128xf32>
    %cst_15 = arith.constant 1.000000e+00 : f32
    %26 = vector.broadcast %cst_15 : f32 to vector<1x128xf32>
    %27 = arith.addf %26, %25 : vector<1x128xf32>
    %28 = arith.divf %26, %27 : vector<1x128xf32>
    %cst_16 = arith.constant 1.000000e+02 : f32
    %29 = vector.broadcast %cst_16 : f32 to vector<1x128xf32>
    %30 = arith.mulf %28, %29 : vector<1x128xf32>
    %c0_17 = arith.constant 0 : index
    %c0_18 = arith.constant 0 : index
    %31 = vector.load %arg7[%c0_17, %c0_18] : memref<1x128xf32, #tpu.memory_space<vmem>>, vector<1x128xf32>
    tpu.vector_store %arg7[%c0_17, %c0_18], %30 {strides = array<i32>} : memref<1x128xf32, #tpu.memory_space<vmem>>, vector<1x128xf32>,
    return
  }
  func.func @transform_0(%arg0: i32) -> (i32, i32) {
    %c0_i32 = arith.constant 0 : i32
    %c0_i32_0 = arith.constant 0 : i32
    return %c0_i32, %arg0 : i32, i32
  }
  func.func @transform_1(%arg0: i32) -> (i32, i32) {
    %c0_i32 = arith.constant 0 : i32
    %c0_i32_0 = arith.constant 0 : i32
    %c0_i32_1 = arith.constant 0 : i32
    return %c0_i32, %c0_i32_0 : i32, i32
  }
  func.func @transform_2(%arg0: i32) -> (i32, i32) {
    %c0_i32 = arith.constant 0 : i32
    %c0_i32_0 = arith.constant 0 : i32
    %c0_i32_1 = arith.constant 0 : i32
    return %c0_i32, %c0_i32_0 : i32, i32
  }
  func.func @transform_3(%arg0: i32) -> (i32, i32) {
    %c0_i32 = arith.constant 0 : i32
    %c0_i32_0 = arith.constant 0 : i32
    %c0_i32_1 = arith.constant 0 : i32
    return %c0_i32, %c0_i32_0 : i32, i32
  }
  func.func @transform_4(%arg0: i32) -> (i32, i32) {
    %c0_i32 = arith.constant 0 : i32
    %c0_i32_0 = arith.constant 0 : i32
    %c0_i32_1 = arith.constant 0 : i32
    return %c0_i32, %c0_i32_0 : i32, i32
  }
  func.func @transform_5(%arg0: i32) -> (i32, i32) {
    %c0_i32 = arith.constant 0 : i32
    %c0_i32_0 = arith.constant 0 : i32
    %c0_i32_1 = arith.constant 0 : i32
    return %c0_i32, %c0_i32_0 : i32, i32
  }
  func.func @transform_6(%arg0: i32) -> (i32, i32) {
    %c0_i32 = arith.constant 0 : i32
    %c0_i32_0 = arith.constant 0 : i32
    return %c0_i32, %arg0 : i32, i32
  }
}

</mosaic_0001>

<bundles_post_ra>
// kernel: tpu_custom_call.1
= control target key start
LH: loop header
LB: loop body
LE: loop exit
PB: predicated region body
PF: predicated region fallthrough
CT: control target
= control target key end

     0   :  { %s360_s0 = inlined_call_operand.vmem [shape: bf16[8,128], index: 0, kind: input, shape index: {}]   ;;  %s361_s1 = inlined_call_operand.vmem [shape: bf16[32,8], index: 1, kind: input, shape index: {}]   ;;  %s362_s2 = inlined_call_operand.vmem [shape: bf16[16,32], index: 2, kind: input, shape index: {}]   ;;  %s363_s3 = inlined_call_operand.vmem [shape: f32[16,1], index: 3, kind: input, shape index: {}]   ;;  %s364_s4 = inlined_call_operand.vmem [shape: f32[16,1], index: 4, kind: input, shape index: {}]   ;;  %s365_s5 = inlined_call_operand.<no memory space> [shape: f32[1,1], index: 5, kind: input, shape index: {}]   ;;  %s366_s6 = inlined_call_operand.hbm [shape: f32[1,128], index: 6, kind: output, shape index: {}]  }
   0x1   :  { %v11_v0 = vstv %s365_s5 }
   0x2   :  { %12 = vst [vmem:[#allocation2] sm:$0x1] %v11_v0 }
   0x3   :  { %v31_v1 = vld [vmem:[%s360_s0] sm:$0xf]  ;;  %vm49_vm0 = vcmask 1043456   ;;  %vm42_vm1 = vcmask 64512   ;;  %v263_v4 = vld [vmem:[%s361_s1 + $0x8] sm:$0xff]  }
   0x4   :  { %v262_v2 = vld [vmem:[%s361_s1] sm:$0xff]   ;;  %255 = vmatprep.subr.msk.bf16.mxu0 %vm49_vm0, %v31_v1  ;;  %v51_v3 = vsel %vm49_vm0, %v31_v1, 0 }
   0x5   :  { %242 = vmatpush3.bf16.msra.mxu0 %v51_v3  ;;  %243 = vmatprep.mubr.msk.bf16.mxu0 %vm42_vm1, %v262_v2 }
   0x6   :  { %13 = vsyncpa [#allocation4], 0  ;;  %v291_v5 = vmov 0.0   ;;  %vm292_vm2 = vmmov 0   ;;  %v110_v6 = vld [vmem:[%s363_s3] sm:$0xff]  ;;  %v293_v8 = vmov 0   ;;  %v201_v37 = vlaneseq }
   0x7   :  { %247 = vmatprep.subr.bf16.mxu1 %v291_v5  ;;  %251 = vmatprep.mubr.msk.bf16.mxu1 %vm292_vm2, %v291_v5  ;;  %v174_v7 = vld [vmem:[%s364_s4] sm:$0xff]  ;;  %v111_v9 = vld [vmem:[%s363_s3 + $0x8] sm:$0xff]  ;;  %vm127_vm3 = vcmask 261120  }
   0x8   :  { %244 = vmatmul.mubr.msk.bf16.vlgmr.msra.gmra.mxu0 %vm42_vm1, %v263_v4  ;;  %260 = vset.pattern.permute.xlu0 %v293_v8  ;;  %v175_v10 = vld [vmem:[%s364_s4 + $0x8] sm:$0xff]  ;;  %v264_v22 = vld [vmem:[%s362_s2] sm:$0xff]   ;;  %v202_v40 = vshrl.u32 %v201_v37, 7  ;;  %s294_s2 = smov [#allocation3]  }
   0x9   :  { %261 = vset.pattern.permute.xlu1 %v293_v8  ;;  %114 = vperm.xlu0 %260, %v110_v6   ;;  %v195_v11 = vld [vmem:[#allocation2] sm:$0x1]  ;;  %s220_s4 = sshll.u32 %s294_s2, 4  ;;  %s221_s4 = int_to_ptr.vmem [resolvable:$true] %s220_s4 }
   0xa   :  { %178 = vperm.xlu1 %261, %v174_v7   ;;  %v203_v43 = vsub.s32 0, %v202_v40  ;;  %s269_s11 = scalar_lea.vmem %s221_s4, 16  ;;  %s273_s12 = scalar_lea.vmem %s221_s4, 32 }
   0xb   :  { %p270_p0 = scmp.ne.s32.totalorder %s221_s4, %s269_s11  ;;  %p274_p1 = scmp.lt.s32.totalorder %s221_s4, %s221_s4 }
   0xc   :  { %p275_p2 = scmp.lt.s32.totalorder %s273_s12, %s269_s11 }
   0xd   :  { %119 = vperm.xlu0 %260, %v111_v9  }
   0xe   :  { %183 = vperm.xlu1 %261, %v175_v10   ;;  %p276_p3 = por %p275_p2, %p274_p1 }
  0x10   :  { %p277_p4 = pnand %p276_p3, %p270_p0 }
  0x11   :  { %198 = vperm.xlu0 %260, %v195_v11  }
  0x84   :  { %v115_v23 = vpop.permute.xlu0 %114 }
  0x85   :  { %v179_v26 = vpop.permute.xlu1 %178 }
  0x88   :  { %v120_v28 = vpop.permute.xlu0 %119 }
  0x89   :  { %v184_v34 = vpop.permute.xlu1 %183 }
  0x8c   :  { %v199_v45 = vpop.permute.xlu0 %198 }
  0x8d   :  { %v204_v47 = vrot.slane %v199_v45, %v203_v43 }
  0xc8   :  { %v245_v12 = vpop.f32.mrf.mxu0 }
  0xc9   :  { %v104_v15 = vmax.f32 %v245_v12, 0.0 }
  0xca   :  { %v87_v13 = vpop.f32.mrf.mxu0 }
  0xcb   :  { %v102_v20 = vmax.f32 %v87_v13, 0.0 }
  0xcc   :  { %v246_v14 = vpop.f32.mrf.mxu0 }
  0xcd   :  { %v105_v16 = vmax.f32 %v246_v14, 0.0 }
  0xce   :  { %v90_v17 = vpop.f32.mrf.mxu0 }
  0xcf   :  { %v103_v18 = vmax.f32 %v90_v17, 0.0  ;;  %v107_v19 = vpack.c.bf16 %v105_v16, %v104_v15 }
  0xd1   :  { %248 = vmatpush3.bf16.msra.mxu1 %v107_v19  ;;  %v106_v21 = vpack.c.bf16 %v103_v18, %v102_v20 }
  0xd2   :  { %249 = vmatprep.subr.bf16.mxu1 %v291_v5 }
  0xd5   :  { %250 = vmatpush3.bf16.msra.mxu1 %v106_v21 }
  0xd8   :  { %252 = vmatmul.mubr.msk.bf16.vlgmr.msra.gmra.mxu1 %vm127_vm3, %v264_v22 }
 0x198   :  { %v165_v24 = vpop.f32.mrf.mxu1 }
 0x199   :  { %v166_v25 = vadd.f32 %v165_v24, %v115_v23 }
 0x19a   :  { %v253_v27 = vpop.f32.mrf.mxu1 }
 0x19b   :  { %v172_v30 = vmax.f32 %v166_v25, 0.0 }
 0x19c   :  { %v168_v29 = vpop.f32.mrf.mxu1 }
 0x19d   :  { %v169_v31 = vadd.f32 %v168_v29, %v120_v28  ;;  %v186_v35 = vmul.f32 %v179_v26, %v172_v30 }
 0x19e   :  { %v254_v32 = vpop.f32.mrf.mxu1 }
 0x19f   :  { %v173_v33 = vmax.f32 %v169_v31, 0.0 }
 0x1a1   :  { %v187_v36 = vmul.f32 %v184_v34, %v173_v33 }
 0x1a3   :  { %v188_v38 = vadd.f32 %v187_v36, %v186_v35 }
 0x1a5   :  { %v189_v39 = vrot.slane %v188_v38, 4 }
 0x1a7   :  { %v190_v41 = vadd.f32 %v189_v39, %v188_v38 }
 0x1a9   :  { %v191_v42 = vrot.slane %v190_v41, 2 }
 0x1ab   :  { %v192_v44 = vadd.f32 %v191_v42, %v190_v41 }
 0x1ad   :  { %v193_v46 = vrot.slane %v192_v44, 1 }
 0x1af   :  { %v194_v48 = vadd.f32 %v193_v46, %v192_v44 }
 0x1b1   :  { %v205_v49 = vadd.f32 %v204_v47, %v194_v48 }
 0x1b3   :  { %v234_v50 = vmul.f32 -1.442695, %v205_v49 }
 0x1b5   :  { %265 = vpow2.f32 %v234_v50 }
 0x1c2   :  { %v266_v51 = vpop.eup %265 }
 0x1c3   :  { %v209_v52 = vadd.f32 1.0, %v266_v51 }
 0x1c5   :  { %267 = vrcp.f32 %v209_v52 }
 0x1d2   :  { %v268_v53 = vpop.eup %267 }
 0x1d3   :  { %v212_v54 = vmul.f32 100.0, %v268_v53 }
 0x1d5   :  { %213 = vst [vmem:[#allocation3] sm:$0x1] %v212_v54 }
 0x1d6   :  { %280 = shalt.err (!%p277_p4)
}
 0x1d7   :  { %223 = dma.vmem_to_hbm [thread:$0]  %s221_s4, 16, %s366_s6, [#allocation4]  }
 0x1d8   :  { %289 = dma.done.wait [#allocation4], 16  }
 0x1d9   :  { %290 = vsyncadd [#allocation4], 4294967280 }
 0x1da   :  { %227 = vsyncpa [#allocation4], 1 }

</bundles_post_ra>
